<compile_context>
chip_gen: v6e
topology: v6e:2x2x1
jax: 0.10.0
libtpu: 0.0.40
codegen_flags: <defaults>
</compile_context>

<pallas_src>
import math
from functools import partial

import jax
import jax.numpy as jnp
from jax.experimental import pallas as pl
from jax.experimental.pallas import tpu as pltpu


def make_pos_embedding(emb_size: int, maxlen: int = 516, dtype=jnp.float32):
    """Deterministic sinusoidal table, identical to the PyTorch __init__."""
    den = jnp.exp(
        -jnp.arange(0, emb_size, 2, dtype=jnp.float32) * math.log(10000.0) / emb_size
    )
    pos = jnp.arange(0, maxlen, dtype=jnp.float32).reshape(maxlen, 1)
    pe = jnp.zeros((maxlen, emb_size), jnp.float32)
    pe = pe.at[:, 0::2].set(jnp.sin(pos * den))
    pe = pe.at[:, 1::2].set(jnp.cos(pos * den))
    return pe[:, None, :].astype(dtype)  # (maxlen, 1, emb_size)


def _choose_block_seq(S, B, E, itemsize):
    """Seq tile: ~2 MiB per (ts,B,E) tile, >=2 grid steps, ts divides S."""
    target_bytes = 2 * 1024 * 1024
    row_bytes = max(1, B * E * itemsize)
    ts = max(1, min(S, target_bytes // row_bytes))
    if ts >= S and S > 1:
        # make sure the grid has at least 2 steps so the software pipeline
        # overlaps DMA/compute and the "parallel" axis can shard across
        # both v7x TensorCores.
        ts = (S + 1) // 2
    while S % ts:  # round down to a divisor of S -> every block is full
        ts -= 1
    return ts


def _pe_add_kernel(x_ref, pe_ref, o_ref, *, ts):
    # x_ref: (ts, B, E)   pe_ref: (S, E) resident table   o_ref: (ts, B, E)
    start = pl.multiple_of(pl.program_id(0) * ts, ts)
    pe = pe_ref[pl.ds(start, ts), :]                      # (ts, E)
    y = x_ref[...].astype(jnp.float32) + pe[:, None, :]   # broadcast over batch
    o_ref[...] = y.astype(o_ref.dtype)


def _pe_add_dropout_kernel(x_ref, pe_ref, bits_ref, o_ref, *, ts, threshold, inv_keep):
    start = pl.multiple_of(pl.program_id(0) * ts, ts)
    pe = pe_ref[pl.ds(start, ts), :]
    y = x_ref[...].astype(jnp.float32) + pe[:, None, :]
    # Integer-threshold Bernoulli: keep with probability 1 - dropout_p.
    keep = bits_ref[...] >= jnp.uint32(threshold)
    y = jnp.where(keep, y * jnp.float32(inv_keep), jnp.float32(0.0))
    o_ref[...] = y.astype(o_ref.dtype)


def positional_encoding(token_embedding, pos_embedding, *, dropout_p=0.0,
                        rng_key=None, block_seq=None):
    """Pallas forward of PositionalEncoding.

    token_embedding: (S, B, E)
    pos_embedding  : (maxlen, 1, E), maxlen >= S
    dropout_p      : 0.0 -> eval mode (identity dropout); >0 needs rng_key.
    """
    S, B, E = token_embedding.shape
    itemsize = jnp.dtype(token_embedding.dtype).itemsize
    ts = _choose_block_seq(S, B, E, itemsize) if block_seq is None else block_seq
    assert S % ts == 0, "block_seq must divide the sequence length"
    grid = (S // ts,)

    # pos_embedding[:x.size(0)] -- squeeze to (S, E); kept f32 (table is tiny).
    pe2d = pos_embedding[:S, 0, :].astype(jnp.float32)

    x_spec = pl.BlockSpec((ts, B, E), lambda i: (i, 0, 0))
    # Positional table fully resident in VMEM: constant block index -> one DMA.
    pe_spec = pl.BlockSpec((S, E), lambda i: (0, 0))
    out_spec = pl.BlockSpec((ts, B, E), lambda i: (i, 0, 0))
    out_shape = jax.ShapeDtypeStruct((S, B, E), token_embedding.dtype)
    cparams = pltpu.CompilerParams(dimension_semantics=("parallel",))
    # TODO(synk): input_output_aliases could donate token_embedding's HBM buffer
    # to the output (saves one full-size allocation when jitted with donation).

    if dropout_p <= 0.0:
        return pl.pallas_call(
            partial(_pe_add_kernel, ts=ts),
            out_shape=out_shape,
            grid_spec=pltpu.PrefetchScalarGridSpec(
                num_scalar_prefetch=0, grid=grid,
                in_specs=[x_spec, pe_spec], out_specs=out_spec),
            compiler_params=cparams,
        )(token_embedding, pe2d)

    assert rng_key is not None, "training-mode dropout requires rng_key"
    keep_p = 1.0 - float(dropout_p)
    threshold = min(int(round(float(dropout_p) * 2.0 ** 32)), 2 ** 32 - 1)
    # TODO(synk): on TPU hardware pltpu.prng_seed/prng_random_bits would generate
    # this mask on-chip and avoid one full-size HBM read; bits are drawn with
    # jax.random here so the kernel also lowers/runs under interpret mode.
    bits = jax.random.bits(rng_key, (S, B, E), jnp.uint32)
    bits_spec = pl.BlockSpec((ts, B, E), lambda i: (i, 0, 0))
    return pl.pallas_call(
        partial(_pe_add_dropout_kernel, ts=ts, threshold=threshold,
                inv_keep=1.0 / keep_p),
        out_shape=out_shape,
        grid_spec=pltpu.PrefetchScalarGridSpec(
            num_scalar_prefetch=0, grid=grid,
            in_specs=[x_spec, pe_spec, bits_spec], out_specs=out_spec),
        compiler_params=cparams,
    )(token_embedding, pe2d, bits)


if __name__ == "__main__":
    emb_size = 128     # lane-aligned last dim (multiple of 128)
    batch = 8          # full sublane occupancy
    seq_len = 8
    maxlen_demo = 150  # module-level maxlen in the source file

    key = jax.random.PRNGKey(0)
    k_x, k_drop = jax.random.split(key)
    token_embedding = jax.random.normal(k_x, (seq_len, batch, emb_size), jnp.float32)
    pos_embedding = make_pos_embedding(emb_size, maxlen_demo)

    # Eval mode (dropout is identity): exact check against the reference.
    out = jax.block_until_ready(
        positional_encoding(token_embedding, pos_embedding, dropout_p=0.0))
    ref = token_embedding + pos_embedding[:seq_len]
    assert out.shape == (seq_len, batch, emb_size)
    assert jnp.allclose(out, ref, atol=1e-6), "eval-mode mismatch vs reference"

    # Training mode: the mask is reproducible from (key, shape), so check exactly.
    p = 0.25
    out_drop = jax.block_until_ready(
        positional_encoding(token_embedding, pos_embedding, dropout_p=p,
                            rng_key=k_drop))
    bits = jax.random.bits(k_drop, (seq_len, batch, emb_size), jnp.uint32)
    keep = bits >= jnp.uint32(int(round(p * 2.0 ** 32)))
    ref_drop = jnp.where(keep, ref * jnp.float32(1.0 / (1.0 - p)), 0.0)
    assert out_drop.shape == (seq_len, batch, emb_size)
    assert jnp.allclose(out_drop, ref_drop, atol=1e-6), "train-mode mismatch"
    keep_rate = float(jnp.mean(keep.astype(jnp.float32)))
    assert 0.55 < keep_rate < 0.95, "dropout keep-rate implausible"

    print("KERNEL_OK")
</pallas_src>

<mosaic_0001>
module attributes {stable_mosaic.version = 11 : i64} {
  func.func @_pe_add_kernel(%arg0: i32, %arg1: memref<4x8x128xf32, #tpu.memory_space<vmem>>, %arg2: memref<8x128xf32, #tpu.memory_space<vmem>>, %arg3: memref<4x8x128xf32, #tpu.memory_space<vmem>>) attributes {dimension_semantics = [#tpu.dimension_semantics<parallel>], iteration_bounds = array<i64: 2>, scalar_prefetch = 0 : i64, scratch_operands = 0 : i64, tpu.core_type = #tpu.core_type<tc>, window_params = [{transform_indices = @transform_0, window_bounds = array<i64: 4, 8, 128>}, {pipeline_mode = #tpu.pipeline_mode<synchronous>, transform_indices = @transform_1, window_bounds = array<i64: 8, 128>}, {transform_indices = @transform_2, window_bounds = array<i64: 4, 8, 128>}]} {
    %c4_i32 = arith.constant 4 : i32
    %0 = arith.muli %arg0, %c4_i32 : i32
    %1 = tpu.assume_multiple %0, 4 : i32
    %2 = arith.index_cast %1 : i32 to index
    %c0 = arith.constant 0 : index
    %3 = vector.load %arg2[%2, %c0] : memref<8x128xf32, #tpu.memory_space<vmem>>, vector<4x128xf32>
    %c0_0 = arith.constant 0 : index
    %c0_1 = arith.constant 0 : index
    %c0_2 = arith.constant 0 : index
    %4 = vector.load %arg1[%c0_0, %c0_1, %c0_2] : memref<4x8x128xf32, #tpu.memory_space<vmem>>, vector<4x8x128xf32>
    %5 = vector.shape_cast %3 : vector<4x128xf32> to vector<4x1x128xf32>
    %6 = vector.broadcast %5 : vector<4x1x128xf32> to vector<4x8x128xf32>
    %7 = arith.addf %4, %6 : vector<4x8x128xf32>
    %c0_3 = arith.constant 0 : index
    %c0_4 = arith.constant 0 : index
    %c0_5 = arith.constant 0 : index
    %8 = vector.load %arg3[%c0_3, %c0_4, %c0_5] : memref<4x8x128xf32, #tpu.memory_space<vmem>>, vector<4x8x128xf32>
    tpu.vector_store %arg3[%c0_3, %c0_4, %c0_5], %7 {strides = array<i32>} : memref<4x8x128xf32, #tpu.memory_space<vmem>>, vector<4x8x128xf32>,
    return
  }
  func.func @transform_0(%arg0: i32) -> (i32, i32, i32) {
    %c0_i32 = arith.constant 0 : i32
    %c0_i32_0 = arith.constant 0 : i32
    %c0_i32_1 = arith.constant 0 : i32
    return %arg0, %c0_i32, %c0_i32_0 : i32, i32, i32
  }
  func.func @transform_1(%arg0: i32) -> (i32, i32) {
    %c0_i32 = arith.constant 0 : i32
    %c0_i32_0 = arith.constant 0 : i32
    %c0_i32_1 = arith.constant 0 : i32
    return %c0_i32, %c0_i32_0 : i32, i32
  }
  func.func @transform_2(%arg0: i32) -> (i32, i32, i32) {
    %c0_i32 = arith.constant 0 : i32
    %c0_i32_0 = arith.constant 0 : i32
    %c0_i32_1 = arith.constant 0 : i32
    return %arg0, %c0_i32, %c0_i32_0 : i32, i32, i32
  }
}

</mosaic_0001>

<bundles_post_ra>
// kernel: tpu_custom_call.1
= control target key start
LH: loop header
LB: loop body
LE: loop exit
PB: predicated region body
PF: predicated region fallthrough
CT: control target
= control target key end

     0   :  { %7 = vsyncpa [#allocation3], 0  ;;  %s747_s0 = inlined_call_operand.hbm [shape: f32[8,8,128], index: 0, kind: input, shape index: {}]   ;;  %s748_s1 = inlined_call_operand.hbm [shape: f32[8,128], index: 1, kind: input, shape index: {}]   ;;  %s749_s2 = inlined_call_operand.hbm [shape: f32[8,8,128], index: 2, kind: output, shape index: {}]  }
   0x1   :  { %9 = vsyncpa [#allocation3 + $0x1], 0 }
   0x2   :  { %10 = vsyncpa [#allocation6], 0 }
   0x3   :  { %11 = vsyncpa [#allocation4], 0 }
   0x4   :  { %13 = vsyncpa [#allocation4 + $0x1], 0  ;;  %s565_s9 = smov 0   ;;  %s567_s10 = smov 0  }
   0x5   :  { %s569_s11 = smov 0   ;;  %s571_s12 = smov 0  }
   0x6 LB: > { %s586_s13 = sadd.s32 4294967295, %s540_s12   ;;  %s336_s14 = sadd.s32 4294967294, %s540_s12   ;;  %s540_s12 = sphi %s571_s12, %s772_s12   ;;  %s536_s11 = sphi %s569_s11, %s771_s11   ;;  %s532_s10 = sphi %s567_s10, %s770_s10   ;;  %s528_s9 = sphi %s565_s9, %s769_s9  }
   0x7   : > { %s590_s15 = sadd.s32 1, %s540_s12   ;;  %s26_s16 = sadd.s32 1, %s536_s11 }
   0x8   : > { %s23_s17 = ssub.s32 %s540_s12, %s590_s15  ;;  %p33_p0 = scmp.ne.s32.totalorder %s536_s11, %s532_s10 }
   0x9   : > { %p24_p1 = scmp.eq.s32.totalorder %s23_s17, 0  ;;  %p34_p2 = scmp.eq.s32.totalorder %s540_s12, 0 }
   0xa   : > { %p39_p3 = scmp.ne.s32.totalorder %s532_s10, %s528_s9  ;;  %p750_p4 = scmp.eq.s32.totalorder %s586_s13, 0 }
   0xb   : > { %s602_s18 = scalar_select %p24_p1, %s536_s11, %s26_s16  }
   0xc   : > { %p604_p5 = por %p34_p2, %p33_p0  ;;  %p610_p6 = por %p750_p4, %p39_p3 }
   0xd   : > { %p84_p7 = scmp.eq.s32.totalorder %s586_s13, 1  ;;  %p90_p8 = scmp.eq.s32.totalorder %s336_s14, 1 }
   0xe   : > { %s755_s20 = scalar_select %p610_p6, 1, 0 }
   0xf   : > { %p337_p9 = scmp.ge.s32.totalorder %s540_s12, 1  ;;  %p97_p10 = scmp.lt.s32.totalorder %s540_s12, 3 }
  0x10   : > { %p617_p11 = por %p84_p7, %p33_p0  ;;  %p621_p12 = por %p90_p8, %p39_p3 }
  0x11   : > { %p625_p13 = pnand %p337_p9, %p97_p10  ;;  %s542_s24 = smov [#allocation5]  }
  0x12   : > { %s756_s21 = scalar_select %p617_p11, 1, 0 }
  0x13   : > { %s757_s22 = scalar_select %p621_p12, 1, 0 }
  0x14   : > { %s758_s23 = scalar_select %p625_p13, 1, 0 }
  0x15   : > { %p364_p2 = pneg %p625_p13  ;;  %s110_s25 = sshll.u32 %s542_s24, 4  ;;  %s111_s25 = int_to_ptr.vmem [resolvable:$true] %s110_s25 }
  0x16   : > { %p377_p4 = scmp.lt.s32.totalorder %s540_s12, 2  ;;  %p759_p0 = scmp.eq.s32.totalorder %s586_s13, 0 }
  0x17   : > { %s121_s27 = sand.u32 1, %s536_s11   ;;  %s429_s30 = scalar_lea.vmem %s111_s25, 128 }
  0x18   : > { %p635_p7 = pnand %p364_p2, %p759_p0  ;;  %p642_p3 = pnand %p377_p4, %p604_p5 }
  0x19   : > { %s340_s29 = sshll.u32 %s121_s27, 5  ;;  %p430_p9 = scmp.ne.s32.totalorder %s111_s25, %s429_s30 }
  0x1a   : > { %p420_p8 = pneg %p635_p7  ;;  %p437_p12 = scmp.lt.s32.totalorder %s111_s25, %s111_s25 }
  0x1b   : > { %p438_p11 = scmp.lt.s32.totalorder %s429_s30, %s429_s30 }
  0x1c   : > { %p432_p10 = pnand %p430_p9, %p420_p8 }
  0x1d   : > { %p439_p2 = por %p438_p11, %p437_p12 }
  0x1e   : > { %p433_p1 = pneg %p432_p10 }
  0x20   : > { %p440_p0 = pnand %p439_p2, %p433_p1 }
  0x22   : > { %443 = shalt.err (!%p440_p0)
}
  0x23   : > { %367 = dma.hbm_to_vmem [thread:$0]  (!%p635_p7), %s748_s1, 128, %s111_s25, [#allocation6]  }
  0x24   : > { %s354_s5 = sshll.u32 %s540_s12, 9  ;;  %s125_s6 = scalar_lea.vmem [#allocation2], %s340_s29 }
  0x25   : > { %s132_s7 = sshll.u32 %s125_s6, 4  ;;  %s657_s16 = scalar_lea.hbm %s747_s0, %s354_s5  ;;  %s659_s7 = int_to_ptr.vmem [resolvable:$true] %s132_s7 }
  0x26   : > { %s661_s17 = scalar_lea.sflag [#allocation3], %s121_s27  ;;  %s444_s19 = scalar_lea.hbm %s657_s16, 512 }
  0x27   : > { %p445_p4 = scmp.ne.s32.totalorder %s657_s16, %s444_s19  ;;  %p446_p5 = pneg %p642_p3 }
  0x28   : > { %s449_s26 = scalar_lea.hbm %s747_s0, 1024  ;;  %p450_p1 = scmp.lt.s32.totalorder %s657_s16, %s747_s0 }
  0x29   : > { %p447_p11 = pnand %p446_p5, %p445_p4  ;;  %p451_p7 = scmp.lt.s32.totalorder %s449_s26, %s444_s19 }
  0x2b   : > { %p448_p12 = pneg %p447_p11  ;;  %p452_p8 = por %p451_p7, %p450_p1 }
  0x2d   : > { %p453_p9 = pnand %p452_p8, %p448_p12 }
  0x2f   : > { %456 = shalt.err (!%p453_p9)
}
  0x30   : > { %s457_s27 = scalar_lea.vmem %s659_s7, 512  ;;  %s543_s3 = smov [#allocation2]  }
  0x31   : > { %p458_p10 = scmp.ne.s32.totalorder %s659_s7, %s457_s27  ;;  %s462_s4 = sshll.u32 %s543_s3, 4  ;;  %s463_s4 = int_to_ptr.vmem [resolvable:$false] %s462_s4 }
  0x32   : > { %s464_s5 = scalar_lea.vmem %s463_s4, 1024  ;;  %p465_p4 = scmp.lt.s32.totalorder %s659_s7, %s463_s4 }
  0x33   : > { %p460_p2 = pnand %p458_p10, %p446_p5  ;;  %p466_p11 = scmp.lt.s32.totalorder %s464_s5, %s457_s27 }
  0x35   : > { %p461_p0 = pneg %p460_p2  ;;  %p467_p6 = por %p466_p11, %p465_p4 }
  0x37   : > { %p468_p13 = pnand %p467_p6, %p461_p0 }
  0x39   : > { %471 = shalt.err (!%p468_p13)
}
  0x3a   : > { %s544_s6 = smov 128   ;;  %s545_s8 = smov 8  }
  0x3b   : > { %371 = dma.hbm_to_vmem [thread:$0]  (!%p642_p3), %s657_s16, 512, %s659_s7, %s661_s17, %s544_s6, %s544_s6, %s545_s8  }
  0x3c   : > { %p762_p5 = scmp.ne.s32.totalorder %s758_s23, 0 }
  0x3d   : > { %s685_s14 = sand.u32 (!%p762_p5), 1, %s532_s10   ;;  %p763_p6 = scmp.ne.s32.totalorder (!%p762_p5), %s755_s20, 0 }
  0x3e   : > { %144 = sbr.rel (%p762_p5) target bundleno = 100 (0x64), region = 28  ;;  %s344_s19 = sshll.u32 (!%p762_p5), %s685_s14, 5 }
  0x3f   : > { %s147_s24 = scalar_lea.sflag (!%p762_p5), [#allocation3], %s685_s14  ;;  %s150_s25 = scalar_lea.vmem (!%p762_p5), [#allocation2], %s344_s19 }
  0x43   : > { %515 = dma.done.wait (%p763_p6), %s147_s24, 512  }
  0x44   : > { %517 = vsyncadd (%p763_p6), %s147_s24, 4294966784  ;;  %p764_p13 = scmp.eq.s32.totalorder %s586_s13, 0 }
  0x46   : > { %519 = dma.done.wait (%p764_p13), [#allocation6], 128   ;;  %p765_p3 = pmov %p764_p13 }
  0x47   : > { %v196_v0 = vlaneseq  ;;  %s347_s23 = sshll.u32 %s586_s13, 2  ;;  %v546_v1 = vmov 1966171168   ;;  %v180_v10 = vld [vmem:[%s150_s25] sm:$0xff]  ;;  %s174_s20 = scalar_lea.vmem [#allocation7], %s344_s19  ;;  %v181_v14 = vld [vmem:[%s150_s25 + $0x8] sm:$0xff] }
  0x48   : > { %521 = vsyncadd (%p765_p3), [#allocation6], 4294967168  ;;  %v194_v2 = vunpack.c.l.s4 %v546_v1  ;;  %s178_s28 = scalar_lea.vmem [#allocation5], %s347_s23  ;;  %s251_s7 = sshll.u32 %s174_s20, 4  ;;  %v182_v15 = vld [vmem:[%s150_s25 + $0x10] sm:$0xff]  ;;  %v183_v20 = vld [vmem:[%s150_s25 + $0x18] sm:$0xff]  ;;  %s699_s7 = int_to_ptr.vmem [resolvable:$true] %s251_s7 }
  0x49   : > { %v197_v3 = vshrl.u32 %v196_v0, 7  ;;  %v348_v7 = vld.sshfl [vmem:[%s178_s28] sm:$0x33 pattern:$0x75316420]  ;;  %s355_s16 = sshll.u32 %s586_s13, 9 }
  0x4a   : > { %v195_v4 = vunpack.c.0.s8 %v194_v2  ;;  %v192_v9 = vcombine.high %v348_v7, %v348_v7  ;;  %s704_s29 = scalar_lea.hbm %s749_s2, %s355_s16  ;;  %s238_s30 = scalar_lea.sflag [#allocation4], %s685_s14 }
  0x4b   : > { %v211_v6 = vsub.s32 0, %v197_v3  ;;  %s472_s13 = scalar_lea.vmem %s699_s7, 512  ;;  %p766_p1 = scmp.ne.s32.totalorder %s756_s21, 0 }
  0x4c   : > { %v198_v5 = vsub.s32 %v195_v4, %v197_v3  ;;  %p473_p12 = scmp.ne.s32.totalorder %s699_s7, %s472_s13  ;;  %s547_s27 = smov [#allocation7]  }
  0x4d   : > { %s476_s3 = sshll.u32 %s547_s27, 4  ;;  %s477_s3 = int_to_ptr.vmem [resolvable:$false] %s476_s3 }
  0x4e   : > { %v199_v8 = vrot.slane %v348_v7, %v198_v5  ;;  %v206_v12 = vrot.slane %v192_v9, %v198_v5  ;;  %p474_p7 = pnand %p473_p12, %p766_p1  ;;  %s478_s4 = scalar_lea.vmem %s477_s3, 1024 }
  0x4f   : > { %p479_p9 = scmp.lt.s32.totalorder %s699_s7, %s477_s3  ;;  %p480_p10 = scmp.lt.s32.totalorder %s478_s4, %s472_s13 }
  0x50   : > { %v212_v11 = vrot.slane %v199_v8, %v211_v6  ;;  %v207_v13 = vcombine.high %v199_v8, %v199_v8  ;;  %v216_v17 = vrot.slane %v206_v12, %v211_v6  ;;  %v208_v19 = vcombine.high %v206_v12, %v206_v12  ;;  %p475_p8 = pneg %p474_p7 }
  0x51   : > { %p481_p2 = por %p480_p10, %p479_p9 }
  0x52   : > { %v229_v16 = vadd.f32 %v212_v11, %v180_v10  ;;  %v220_v18 = vrot.slane %v207_v13, %v211_v6  ;;  %v230_v21 = vadd.f32 %v216_v17, %v181_v14  ;;  %v224_v23 = vrot.slane %v208_v19, %v211_v6 }
  0x53   : > { %p482_p0 = pnand %p481_p2, %p475_p8 }
  0x54   : > { %233 = vst [vmem:[%s174_s20] sm:$0xff] %v229_v16  ;;  %v231_v22 = vadd.f32 %v220_v18, %v182_v15  ;;  %234 = vst [vmem:[%s174_s20 + $0x8] sm:$0xff] %v230_v21  ;;  %v232_v24 = vadd.f32 %v224_v23, %v183_v20 }
  0x56   : > { %235 = vst [vmem:[%s174_s20 + $0x10] sm:$0xff] %v231_v22  ;;  %236 = vst [vmem:[%s174_s20 + $0x18] sm:$0xff] %v232_v24 }
  0x57   : > { %485 = shalt.err (!%p482_p0)
}
  0x58   : > { %s486_s5 = scalar_lea.hbm %s704_s29, 512  ;;  %s490_s19 = scalar_lea.hbm %s749_s2, 1024 }
  0x59   : > { %p487_p4 = scmp.ne.s32.totalorder %s704_s29, %s486_s5  ;;  %p491_p6 = scmp.lt.s32.totalorder %s704_s29, %s749_s2 }
  0x5a   : > { %p492_p13 = scmp.lt.s32.totalorder %s490_s19, %s486_s5 }
  0x5b   : > { %p488_p11 = pnand %p487_p4, %p766_p1 }
  0x5c   : > { %p493_p3 = por %p492_p13, %p491_p6 }
  0x5d   : > { %p489_p5 = pneg %p488_p11 }
  0x5f   : > { %p494_p12 = pnand %p493_p3, %p489_p5 }
  0x61   : > { %497 = shalt.err (!%p494_p12)
}
  0x62   : > { %s548_s23 = smov 128   ;;  %s549_s28 = smov 8  }
  0x63   : > { %362 = dma.vmem_to_hbm [thread:$0]  (%p766_p1), %s699_s7, 512, %s704_s29, %s238_s30, %s548_s23, %s548_s23, %s549_s28  }
  0x64 PF: > { %s266_s20 = sand.u32 1, %s528_s9   ;;  %p767_p7 = scmp.ne.s32.totalorder %s757_s22, 0 }
  0x65   : > { %p768_p8 = scmp.ge.s32.totalorder %s540_s12, 2  ;;  %s267_s16 = scalar_lea.sflag [#allocation4], %s266_s20 }
  0x67   : > { %p373_p9 = pnand %p768_p8, %p767_p7 }
  0x69   : > { %p374_p10 = pneg %p373_p9 }
  0x6b   : > { %523 = dma.done.wait (%p374_p10), %s267_s16, 512  }
  0x6c   : > { %525 = vsyncadd (%p374_p10), %s267_s16, 4294966784  ;;  %p16_p2 = scmp.ge.s32.totalorder %s590_s15, 4   ;;  %s769_s9 = smov %s532_s10 }
  0x6d   : > { %s770_s10 = smov %s536_s11  ;;  %s771_s11 = smov %s602_s18 }
  0x6e   : > { %s772_s12 = smov %s590_s15  ;;  %18 = sbr.rel (!%p16_p2) target bundleno = 6 (0x6), region = 78 }
  0x73   :  { %272 = vsyncpa [#allocation3], 1 }
  0x74   :  { %274 = vsyncpa [#allocation3 + $0x1], 1 }
  0x75   :  { %275 = vsyncpa [#allocation6], 1 }
  0x76   :  { %276 = vsyncpa [#allocation4], 1 }
  0x77   :  { %278 = vsyncpa [#allocation4 + $0x1], 1 }

</bundles_post_ra>
